<compile_context>
chip_gen: v7x
topology: tpu7x:2x2x1
jax: 0.10.0
libtpu: 0.0.40
codegen_flags: <defaults>
</compile_context>

<pallas_src>
import jax
import jax.numpy as jnp
from jax.experimental import pallas as pl
from jax.experimental.pallas import tpu as pltpu


# ---------------------------------------------------------------------------
# Specialized VPU-only kernel for n_feature == 1 and n_output == 1
# ---------------------------------------------------------------------------
def mlp_f1o1_kernel(xt_ref, params_ref, b2_ref, ot_ref):
    # xt    : (1, Np)  batch on lanes (Np = N padded to a multiple of 128)
    # params: (H, 3)   columns = [w1 | b1 | w2]   (single VMEM operand)
    # b2    : (1, 1)   SMEM scalar
    # out   : (1, Np)  lane-dense store; wrapper slices/reshapes to (N, 1)
    xt = xt_ref[...]                                    # (1, Np)
    w1 = params_ref[:, 0:1]                             # (H, 1)
    b1 = params_ref[:, 1:2]                             # (H, 1)
    w2 = params_ref[:, 2:3]                             # (H, 1)
    h = jnp.maximum(w1 * xt + b1, 0.0)                  # (H, Np) VPU outer product + ReLU
    contrib = h * w2                                    # (H, Np) VPU
    out_t = jnp.sum(contrib, axis=0, keepdims=True)     # (1, Np) sublane reduce
    ot_ref[...] = (out_t + b2_ref[0, 0]).astype(ot_ref.dtype)


# ---------------------------------------------------------------------------
# General fused-MLP kernel (batch-tiled grid, bf16 MXU operands, f32 accumulate)
# ---------------------------------------------------------------------------
def mlp_general_kernel(x_ref, w1t_ref, b1_ref, w2t_ref, b2_ref, o_ref):
    # x: (TN, F) bf16   w1t: (F, H) bf16   b1: (1, H) f32
    # w2t: (H, O) bf16  b2: (1, O) f32     out: (TN, O) f32
    h = jnp.dot(x_ref[...], w1t_ref[...], preferred_element_type=jnp.float32)
    h = jnp.maximum(h + b1_ref[...], 0.0)               # bias + ReLU in f32 (VPU)
    out = jnp.dot(h.astype(jnp.bfloat16), w2t_ref[...],
                  preferred_element_type=jnp.float32) + b2_ref[...]
    o_ref[...] = out.astype(o_ref.dtype)


def _net_forward_impl(x, w1, b1, w2, b2):
    """Fused forward of Net: ReLU(x @ w1.T + b1) @ w2.T + b2.

    x : (N, F) float32.  PyTorch weight convention:
    w1: (H, F), b1: (H,), w2: (O, H), b2: (O,).  Returns (N, O) float32.
    """
    N, F = x.shape
    H = w1.shape[0]
    O = w2.shape[0]

    if F == 1 and O == 1:
        # --- VPU-only specialized path (matches the torch script's shapes) ---
        LANES = 128
        n_pad = pl.cdiv(N, LANES) * LANES
        xt = jnp.pad(x[:, 0].astype(jnp.float32), (0, n_pad - N)).reshape(1, n_pad)
        params = jnp.stack([w1[:, 0], b1, w2[0, :]], axis=1).astype(jnp.float32)  # (H, 3)
        b2_s = b2.reshape(1, 1).astype(jnp.float32)

        out_t = pl.pallas_call(
            mlp_f1o1_kernel,
            out_shape=jax.ShapeDtypeStruct((1, n_pad), jnp.float32),
            grid=(),
            in_specs=[
                pl.BlockSpec((1, n_pad), lambda: (0, 0)),
                pl.BlockSpec((H, 3), lambda: (0, 0)),
                pl.BlockSpec((1, 1), lambda: (0, 0),
                             memory_space=pltpu.MemorySpace.SMEM),
            ],
            out_specs=pl.BlockSpec((1, n_pad), lambda: (0, 0)),
        )(xt, params, b2_s)
        return out_t[0, :N].reshape(N, 1)

    # --- General path: batch-tiled grid, bf16 MXU operands, f32 accumulate ---
    TN = 256                                   # fits comfortably in v7x's 32 MiB scoped VMEM
    n_pad = pl.cdiv(N, TN) * TN
    x_p = jnp.pad(x.astype(jnp.bfloat16), ((0, n_pad - N), (0, 0)))   # (n_pad, F)
    w1t = w1.T.astype(jnp.bfloat16)            # (F, H)
    w2t = w2.T.astype(jnp.bfloat16)            # (H, O)
    b1_2d = b1.reshape(1, H).astype(jnp.float32)
    b2_2d = b2.reshape(1, O).astype(jnp.float32)

    out = pl.pallas_call(
        mlp_general_kernel,
        out_shape=jax.ShapeDtypeStruct((n_pad, O), jnp.float32),
        grid=(n_pad // TN,),
        in_specs=[
            pl.BlockSpec((TN, F), lambda i: (i, 0)),   # streamed batch tiles
            pl.BlockSpec((F, H), lambda i: (0, 0)),    # resident weights
            pl.BlockSpec((1, H), lambda i: (0, 0)),
            pl.BlockSpec((H, O), lambda i: (0, 0)),
            pl.BlockSpec((1, O), lambda i: (0, 0)),
        ],
        out_specs=pl.BlockSpec((TN, O), lambda i: (i, 0)),
        compiler_params=pltpu.CompilerParams(
            dimension_semantics=("parallel",),
            vmem_limit_bytes=64 * 1024 * 1024),
    )(x_p, w1t, b1_2d, w2t, b2_2d)
    return out[:N, :]


# One dispatch for reshapes/pads/transposes + kernel launch.
net_forward = jax.jit(_net_forward_impl)


def torch_linear_init(key, out_features, in_features):
    """Deterministic init matching torch.nn.Linear's default scheme:
    U(-1/sqrt(fan_in), 1/sqrt(fan_in)) for both weight and bias."""
    kw, kb = jax.random.split(key)
    bound = 1.0 / jnp.sqrt(jnp.float32(in_features))
    w = jax.random.uniform(kw, (out_features, in_features), jnp.float32,
                           minval=-bound, maxval=bound)
    b = jax.random.uniform(kb, (out_features,), jnp.float32,
                           minval=-bound, maxval=bound)
    return w, b


def _reference(x, w1, b1, w2, b2):
    return jnp.maximum(x @ w1.T + b1, 0.0) @ w2.T + b2


if __name__ == "__main__":
    # Mirrors the torch script: x = unsqueeze(linspace(-1, 1, 100), dim=1)
    n_feature, n_hidden, n_output = 1, 32, 1
    N = 100

    x = jnp.linspace(-1.0, 1.0, N, dtype=jnp.float32).reshape(N, 1)

    key = jax.random.PRNGKey(0)
    k1, k2 = jax.random.split(key)
    w1, b1 = torch_linear_init(k1, n_hidden, n_feature)   # hidden:  (H, F), (H,)
    w2, b2 = torch_linear_init(k2, n_output, n_hidden)    # predict: (O, H), (O,)

    out = jax.block_until_ready(net_forward(x, w1, b1, w2, b2))

    ref = _reference(x, w1, b1, w2, b2)
    assert out.shape == (N, n_output)
    assert jnp.allclose(out, ref, atol=1e-5, rtol=1e-5), "specialized path mismatch"

    # Exercise the general (MXU, bf16-input) path for arbitrary Net shapes.
    kg1, kg2, kgx = jax.random.split(jax.random.PRNGKey(1), 3)
    Fg, Hg, Og, Ng = 8, 32, 4, 16
    gw1, gb1 = torch_linear_init(kg1, Hg, Fg)
    gw2, gb2 = torch_linear_init(kg2, Og, Hg)
    gx = jax.random.normal(kgx, (Ng, Fg), jnp.float32)
    gout = jax.block_until_ready(net_forward(gx, gw1, gb1, gw2, gb2))
    gref = _reference(gx, gw1, gb1, gw2, gb2)
    assert gout.shape == (Ng, Og)
    # bf16 MXU operands (f32 accumulation) -> looser tolerance on this path.
    assert jnp.allclose(gout, gref, atol=5e-2, rtol=5e-2), "general path mismatch"

    print("KERNEL_OK")
</pallas_src>

<mosaic_0001>
module attributes {stable_mosaic.version = 11 : i64} {
  func.func @mlp_f1o1_kernel(%arg0: memref<1x128xf32, #tpu.memory_space<vmem>>, %arg1: memref<32x3xf32, #tpu.memory_space<vmem>>, %arg2: memref<1x1xf32, #tpu.memory_space<smem>>, %arg3: memref<1x128xf32, #tpu.memory_space<vmem>>) attributes {dimension_semantics = [], scalar_prefetch = 0 : i64, scratch_operands = 0 : i64, tpu.core_type = #tpu.core_type<tc>} {
    %c0 = arith.constant 0 : index
    %c0_0 = arith.constant 0 : index
    %0 = vector.load %arg0[%c0, %c0_0] : memref<1x128xf32, #tpu.memory_space<vmem>>, vector<1x128xf32>
    %c0_1 = arith.constant 0 : index
    %c0_2 = arith.constant 0 : index
    %1 = vector.load %arg1[%c0_1, %c0_2] : memref<32x3xf32, #tpu.memory_space<vmem>>, vector<32x1xf32>
    %c0_3 = arith.constant 0 : index
    %c1 = arith.constant 1 : index
    %2 = vector.load %arg1[%c0_3, %c1] : memref<32x3xf32, #tpu.memory_space<vmem>>, vector<32x1xf32>
    %c0_4 = arith.constant 0 : index
    %c2 = arith.constant 2 : index
    %3 = vector.load %arg1[%c0_4, %c2] : memref<32x3xf32, #tpu.memory_space<vmem>>, vector<32x1xf32>
    %4 = vector.broadcast %1 : vector<32x1xf32> to vector<32x128xf32>
    %5 = vector.broadcast %0 : vector<1x128xf32> to vector<32x128xf32>
    %6 = arith.mulf %4, %5 : vector<32x128xf32>
    %7 = vector.broadcast %2 : vector<32x1xf32> to vector<32x128xf32>
    %8 = arith.addf %6, %7 : vector<32x128xf32>
    %cst = arith.constant 0.000000e+00 : f32
    %9 = vector.broadcast %cst : f32 to vector<32x128xf32>
    %10 = arith.maximumf %8, %9 : vector<32x128xf32>
    %11 = vector.broadcast %3 : vector<32x1xf32> to vector<32x128xf32>
    %12 = arith.mulf %10, %11 : vector<32x128xf32>
    %cst_5 = arith.constant dense<0.000000e+00> : vector<128xf32>
    %13 = vector.multi_reduction <add>, %12, %cst_5 [0] : vector<32x128xf32> to vector<128xf32>
    %14 = vector.shape_cast %13 : vector<128xf32> to vector<1x128xf32>
    %c0_6 = arith.constant 0 : index
    %c0_7 = arith.constant 0 : index
    %15 = memref.load %arg2[%c0_6, %c0_7] : memref<1x1xf32, #tpu.memory_space<smem>>
    %16 = vector.broadcast %15 : f32 to vector<1x128xf32>
    %17 = arith.addf %14, %16 : vector<1x128xf32>
    %c0_8 = arith.constant 0 : index
    %c0_9 = arith.constant 0 : index
    %18 = vector.load %arg3[%c0_8, %c0_9] : memref<1x128xf32, #tpu.memory_space<vmem>>, vector<1x128xf32>
    tpu.vector_store %arg3[%c0_8, %c0_9], %17 {strides = array<i32>} : memref<1x128xf32, #tpu.memory_space<vmem>>, vector<1x128xf32>,
    return
  }
}

</mosaic_0001>

<bundles_post_ra>
// kernel: _net_forward_impl.1
= control target key start
LH: loop header
LB: loop body
LE: loop exit
PB: predicated region body
PF: predicated region fallthrough
CT: control target
= control target key end

     0   :  { %v123_v0 = vmov 0   ;;  %v124_v4 = vmov 1   ;;  %v125_v6 = vmov 2   ;;  %s167_s1 = inlined_call_operand.vmem [shape: f32[32,3], index: 1, kind: input, shape index: {}]   ;;  %s168_s0 = inlined_call_operand.vmem [shape: f32[1,128], index: 0, kind: input, shape index: {}]   ;;  %s169_s2 = inlined_call_operand.<no memory space> [shape: f32[1,1], index: 2, kind: input, shape index: {}]   ;;  %s170_s3 = inlined_call_operand.vmem [shape: f32[1,128], index: 3, kind: output, shape index: {}]  }
   0x1   :  { %116 = vset.pattern.permute.xlu1 %v123_v0  ;;  %115 = vset.pattern.permute.xlu0 %v123_v0  ;;  %v18_v1 = vld [vmem:[%s167_s1 + $0x10] sm:$0xff]  ;;  %v16_v2 = vld [vmem:[%s167_s1] sm:$0xff]  ;;  %v17_v3 = vld [vmem:[%s167_s1 + $0x8] sm:$0xff]  ;;  %v104_v44 = vstv %s169_s2 }
   0x2   :  { %32 = vperm.xlu1 %116, %v18_v1   ;;  %22 = vperm.xlu0 %115, %v16_v2   ;;  %v19_v5 = vld [vmem:[%s167_s1 + $0x18] sm:$0xff]  ;;  %v111_v13 = vld [vmem:[%s168_s0] ss:$0 sm:$0xff] }
   0x6   :  { %117 = vset.pattern.permute.xlu1 %v124_v4  ;;  %27 = vperm.xlu0 %115, %v17_v3  }
   0x7   :  { %51 = vperm.xlu1 %117, %v16_v2  }
   0xa   :  { %118 = vset.pattern.permute.xlu0 %v124_v4 }
   0xb   :  { %119 = vset.pattern.permute.xlu1 %v123_v0  ;;  %55 = vperm.xlu0 %118, %v17_v3  }
   0xc   :  { %37 = vperm.xlu1 %119, %v19_v5  }
   0xf   :  { %63 = vperm.xlu0 %118, %v19_v5  }
  0x10   :  { %120 = vset.pattern.permute.xlu1 %v124_v4 }
  0x11   :  { %59 = vperm.xlu1 %120, %v18_v1  }
  0x13   :  { %122 = vset.pattern.permute.xlu0 %v125_v6 }
  0x14   :  { %79 = vperm.xlu0 %122, %v17_v3  }
  0x15   :  { %121 = vset.pattern.permute.xlu1 %v125_v6 }
  0x16   :  { %75 = vperm.xlu1 %121, %v16_v2  }
  0x1a   :  { %83 = vperm.xlu1 %121, %v18_v1  }
  0x1e   :  { %87 = vperm.xlu1 %121, %v19_v5  }
  0x81   :  { %v33_v7 = vpop.permute.xlu1 %32  ;;  %v23_v8 = vpop.permute.xlu0 %22 }
  0x82   :  { %v46_v14 = vmul.f32 %v111_v13, %v23_v8  ;;  %v48_v18 = vmul.f32 %v111_v13, %v33_v7 }
  0x85   :  { %v28_v9 = vpop.permute.xlu0 %27 }
  0x86   :  { %v52_v10 = vpop.permute.xlu1 %51  ;;  %v47_v15 = vmul.f32 %v111_v13, %v28_v9 }
  0x87   :  { %v66_v19 = vadd.f32 %v52_v10, %v46_v14 }
  0x89   :  { %v70_v24 = vmax.f32 %v66_v19, 0.0 }
  0x8a   :  { %v56_v11 = vpop.permute.xlu0 %55 }
  0x8b   :  { %v38_v12 = vpop.permute.xlu1 %37  ;;  %v67_v20 = vadd.f32 %v56_v11, %v47_v15 }
  0x8c   :  { %v49_v21 = vmul.f32 %v111_v13, %v38_v12 }
  0x8d   :  { %v71_v26 = vmax.f32 %v67_v20, 0.0 }
  0x8e   :  { %v64_v17 = vpop.permute.xlu0 %63 }
  0x8f   :  { %v69_v27 = vadd.f32 %v64_v17, %v49_v21 }
  0x90   :  { %v60_v16 = vpop.permute.xlu1 %59 }
  0x91   :  { %v68_v22 = vadd.f32 %v60_v16, %v48_v18  ;;  %v73_v33 = vmax.f32 %v69_v27, 0.0 }
  0x93   :  { %v80_v25 = vpop.permute.xlu0 %79  ;;  %v72_v28 = vmax.f32 %v68_v22, 0.0 }
  0x94   :  { %v91_v31 = vmul.f32 %v80_v25, %v71_v26 }
  0x95   :  { %v76_v23 = vpop.permute.xlu1 %75 }
  0x96   :  { %v90_v29 = vmul.f32 %v76_v23, %v70_v24 }
  0x98   :  { %v94_v34 = vadd.f32 %v91_v31, %v90_v29 }
  0x99   :  { %v84_v30 = vpop.permute.xlu1 %83 }
  0x9a   :  { %v92_v32 = vmul.f32 %v84_v30, %v72_v28 }
  0x9c   :  { %v95_v36 = vadd.f32 %v94_v34, %v92_v32 }
  0x9d   :  { %v88_v35 = vpop.permute.xlu1 %87 }
  0x9e   :  { %v93_v37 = vmul.f32 %v88_v35, %v73_v33 }
  0xa0   :  { %v96_v38 = vadd.f32 %v95_v36, %v93_v37 }
  0xa2   :  { %v97_v39 = vrot.slane %v96_v38, 4 }
  0xa4   :  { %v98_v40 = vadd.f32 %v97_v39, %v96_v38 }
  0xa6   :  { %v99_v41 = vrot.slane %v98_v40, 2 }
  0xa8   :  { %v100_v42 = vadd.f32 %v99_v41, %v98_v40 }
  0xaa   :  { %v101_v43 = vrot.slane %v100_v42, 1 }
  0xac   :  { %v102_v45 = vadd.f32 %v101_v43, %v100_v42 }
  0xae   :  { %v105_v46 = vadd.f32 %v104_v44, %v102_v45 }
  0xb0   :  { %106 = vst [vmem:[%s170_s3] sm:$0x1] %v105_v46 }

</bundles_post_ra>
